<compile_context>
chip_gen: v5e
topology: v5e:2x2
jax: 0.10.0
libtpu: 0.0.40
codegen_flags: <defaults>
</compile_context>

<pallas_src>
import functools

import numpy as np
import jax
import jax.numpy as jnp
from jax.experimental import pallas as pl
from jax.experimental.pallas import tpu as pltpu

# ----------------------------- configuration --------------------------------
# Real module: CNN feature dim = 2048 (hard-coded by ResNet-101), n_hid = 1024.
# We keep the 2048-dim CNN features and use a small hidden size for the demo.
C_FEAT = 2048          # CNN output channels (LSTM input size)
N_HID = 128            # LSTM hidden size per direction (module default: 1024)
PATCH = 4              # stand-in conv kernel/stride
IMG_CH = 3             # RGB input
K_PAD = 128            # contraction dim of the CNN matmul, padded to a full lane tile

_VMEM_LIMIT = 32 * 1024 * 1024


def _round_up(x, m):
    return ((x + m - 1) // m) * m


# ----------------------------- Pallas kernels -------------------------------
def cnn_pool_kernel(p_ref, w_ref, b_ref, o_ref):
    """Pool-then-project for ALL boxes in one step.

    AdaptiveAvgPool2d((1,1)) commutes with the linear patch-conv, so we mean
    over patches first (VPU) and run a single (N, K)@(K, C) MXU matmul.
    (Only valid because the stand-in conv is linear with a post-pool bias.)
    """
    pooled = jnp.mean(p_ref[...].astype(jnp.float32), axis=1)          # (N, K)
    o_ref[...] = (jnp.dot(pooled.astype(jnp.bfloat16), w_ref[...],
                          preferred_element_type=jnp.float32)
                  + b_ref[...])                                        # (N, C)


def gates_matmul_kernel(x_ref, w_ref, b_ref, o_ref):
    """Hoisted input projection: gates_x = x @ w_ih + (b_ih + b_hh).

    One large MXU matmul over all timesteps/batch rows; grid axis = direction.
    """
    o_ref[0] = (jnp.dot(x_ref[...], w_ref[0],
                        preferred_element_type=jnp.float32)
                + b_ref[0])                                            # (T*B, 4H)


def lstm_step_kernel(g_ref, m_ref, whh_ref, out_ref, hn_ref, h_scr, c_scr,
                     *, hidden):
    """One LSTM step. grid = (direction, time); (h, c) carried in VMEM scratch.

    The input projection is precomputed (g_ref), so the step only does the
    recurrent h @ w_hh matmul plus the elementwise cell update.
    NOTE: the mask-freeze emulation of packed sequences is only correct with a
    zero initial hidden/cell state (matches nn.LSTM default).
    """
    t = pl.program_id(1)
    t_last = pl.num_programs(1) - 1

    @pl.when(t == 0)
    def _():
        h_scr[...] = jnp.zeros_like(h_scr)
        c_scr[...] = jnp.zeros_like(c_scr)

    h = h_scr[...]                     # (B, H) f32
    c = c_scr[...]                     # (B, H) f32

    gates = g_ref[0, 0] + jnp.dot(h.astype(jnp.bfloat16), whh_ref[0],
                                  preferred_element_type=jnp.float32)  # (B, 4H)

    H = hidden                         # PyTorch gate order [i, f, g, o]
    i = jax.nn.sigmoid(gates[:, 0 * H:1 * H])
    f = jax.nn.sigmoid(gates[:, 1 * H:2 * H])
    g = jnp.tanh(gates[:, 2 * H:3 * H])
    o = jax.nn.sigmoid(gates[:, 3 * H:4 * H])

    c_new = f * c + i * g
    h_new = o * jnp.tanh(c_new)

    keep = m_ref[0] > 0.5                                # (B, 1) validity mask
    h_next = jnp.where(keep, h_new, h)                   # freeze past seq end
    c_next = jnp.where(keep, c_new, c)
    h_scr[...] = h_next
    c_scr[...] = c_next

    out_ref[0, 0] = jnp.where(keep, h_new, jnp.zeros_like(h_new))  # pad -> 0

    @pl.when(t == t_last)
    def _():
        hn_ref[0] = h_next                               # single h_n store


# ----------------------------- wrappers --------------------------------------
def cnn_features(stacked_images, w_conv, b_conv):
    """(N, 3, S, S) NCHW -> (N, C_FEAT) via Pallas pooled-patch matmul."""
    N, C_in, S, _ = stacked_images.shape
    k = PATCH
    P = (S // k) * (S // k)
    K = C_in * k * k
    Np = _round_up(max(N, 8), 8)

    # im2col: (N, C, S, S) -> (N, P, K), patch flattening order (c, kh, kw)
    patches = (stacked_images
               .reshape(N, C_in, S // k, k, S // k, k)
               .transpose(0, 2, 4, 1, 3, 5)
               .reshape(N, P, K))
    # pad boxes to a sublane multiple and K up to a full 128 lane tile (zeros
    # contribute nothing to the contraction); cast operands to bf16 for the MXU.
    patches = jnp.pad(patches, ((0, Np - N), (0, 0), (0, K_PAD - K)))
    patches = patches.astype(jnp.bfloat16)
    w_pad = jnp.pad(w_conv, ((0, K_PAD - K), (0, 0))).astype(jnp.bfloat16)

    out = pl.pallas_call(
        cnn_pool_kernel,
        grid=(1,),
        in_specs=[
            pl.BlockSpec((Np, P, K_PAD), lambda n: (0, 0, 0)),
            pl.BlockSpec((K_PAD, C_FEAT), lambda n: (0, 0)),
            pl.BlockSpec((1, C_FEAT), lambda n: (0, 0)),
        ],
        out_specs=pl.BlockSpec((Np, C_FEAT), lambda n: (0, 0)),
        out_shape=jax.ShapeDtypeStruct((Np, C_FEAT), jnp.float32),
        compiler_params=pltpu.CompilerParams(
            dimension_semantics=("arbitrary",),
            vmem_limit_bytes=_VMEM_LIMIT),
    )(patches, w_pad, b_conv)
    return out[:N]


def lstm_input_gates(x, w_ih_all, b_all):
    """gates_x[d] = x2d @ w_ih[d] + b[d] as one big MXU matmul per direction."""
    T, Bp, D = x.shape
    H4 = w_ih_all.shape[-1]
    x2d = x.reshape(T * Bp, D).astype(jnp.bfloat16)

    gates = pl.pallas_call(
        gates_matmul_kernel,
        grid=(2,),
        in_specs=[
            pl.BlockSpec((T * Bp, D), lambda d: (0, 0)),
            pl.BlockSpec((1, D, H4), lambda d: (d, 0, 0)),
            pl.BlockSpec((1, 1, H4), lambda d: (d, 0, 0)),
        ],
        out_specs=pl.BlockSpec((1, T * Bp, H4), lambda d: (d, 0, 0)),
        out_shape=jax.ShapeDtypeStruct((2, T * Bp, H4), jnp.float32),
        compiler_params=pltpu.CompilerParams(
            dimension_semantics=("parallel",),
            vmem_limit_bytes=_VMEM_LIMIT),
    )(x2d, w_ih_all.astype(jnp.bfloat16), b_all)
    return gates.reshape(2, T, Bp, H4)


def run_bidir_lstm(gates, mask, w_hh_all):
    """Fused bidirectional LSTM.

    gates:    (2, T, Bp, 4H) precomputed input projections (dir 0=fwd, 1=bwd)
    mask:     (T, Bp, 1) float, 1.0 where t < length of that (sorted) sequence
    w_hh_all: (2, H, 4H)
    returns (out (2, T, Bp, H) with zeros at padded steps, h_n (2, Bp, H))
    """
    _, T, Bp, H4 = gates.shape
    H = w_hh_all.shape[1]

    # Reverse direction handled purely by the index_map (time index T-1-t).
    def tmap(d, t):
        return (1 - d) * t + d * (T - 1 - t)

    out, hn = pl.pallas_call(
        functools.partial(lstm_step_kernel, hidden=H),
        grid=(2, T),
        in_specs=[
            pl.BlockSpec((1, 1, Bp, H4), lambda d, t: (d, tmap(d, t), 0, 0)),
            pl.BlockSpec((1, Bp, 1), lambda d, t: (tmap(d, t), 0, 0)),
            pl.BlockSpec((1, H, H4), lambda d, t: (d, 0, 0)),
        ],
        out_specs=(
            pl.BlockSpec((1, 1, Bp, H), lambda d, t: (d, tmap(d, t), 0, 0)),
            pl.BlockSpec((1, Bp, H), lambda d, t: (d, 0, 0)),
        ),
        out_shape=(
            jax.ShapeDtypeStruct((2, T, Bp, H), jnp.float32),
            jax.ShapeDtypeStruct((2, Bp, H), jnp.float32),
        ),
        scratch_shapes=[
            pltpu.VMEM((Bp, H), jnp.float32),   # h carry
            pltpu.VMEM((Bp, H), jnp.float32),   # c carry
        ],
        compiler_params=pltpu.CompilerParams(
            # direction axis "parallel" -> megacore sharding on v7x (2 TCs)
            dimension_semantics=("parallel", "arbitrary"),
            vmem_limit_bytes=_VMEM_LIMIT),
    )(gates, mask, w_hh_all.astype(jnp.bfloat16))
    return out, hn


def encoder_for_detector_forward(stacked_images, num_box, params):
    """Mirrors EncoderForDetector.forward.

    stacked_images: (sum(num_box), 3, S, S) float32, NCHW
    num_box:        python list of per-image box counts
    returns (features (B,1,1,2*N_HID), lstm_output (N_max,B,2*N_HID), sorted_idx)
    """
    batch_size = len(num_box)
    n_total = int(sum(num_box))

    # ---- CNN + adaptive pool (Pallas) ----
    cnn_out = cnn_features(stacked_images, params["w_conv"], params["b_conv"])

    # ---- pack_sequence / pad_packed_sequence emulation (host glue) ----
    nb = np.asarray(num_box)
    start_idx = np.concatenate([[0], np.cumsum(nb)])
    sorted_idx = np.argsort(-nb)                              # descending lengths
    sorted_len = nb[sorted_idx]
    T = int(sorted_len[0])
    Bp = _round_up(max(batch_size, 8), 8)                     # pad B to sublanes

    # Single gather with a zero-sentinel row (no per-image dynamic_update_slice).
    gather_idx = np.full((T, Bp), n_total, dtype=np.int32)    # sentinel -> zero row
    for j, i in enumerate(sorted_idx):
        L = int(nb[i])
        gather_idx[:L, j] = start_idx[i] + np.arange(L)
    cnn_ext = jnp.concatenate(
        [cnn_out, jnp.zeros((1, C_FEAT), cnn_out.dtype)], axis=0)
    x = jnp.take(cnn_ext, jnp.asarray(gather_idx), axis=0)    # (T, Bp, C_FEAT)

    len_pad = np.zeros((Bp,), np.int64)
    len_pad[:batch_size] = sorted_len
    mask = (np.arange(T)[:, None] < len_pad[None, :]).astype(np.float32)
    mask = jnp.asarray(mask)[:, :, None]                      # (T, Bp, 1)

    # ---- hoisted input projection: one big matmul for both directions ----
    w_ih_all = jnp.stack([params["w_ih_f"], params["w_ih_b"]], axis=0)  # (2,D,4H)
    b_all = jnp.stack([params["b_f"], params["b_b"]], axis=0)           # (2,1,4H)
    gates = lstm_input_gates(x, w_ih_all, b_all)                        # (2,T,Bp,4H)

    # ---- fused bidirectional LSTM recurrence (Pallas) ----
    w_hh_all = jnp.stack([params["w_hh_f"], params["w_hh_b"]], axis=0)  # (2,H,4H)
    out, hn = run_bidir_lstm(gates, mask, w_hh_all)

    lstm_output = jnp.concatenate(
        [out[0, :, :batch_size, :], out[1, :, :batch_size, :]], axis=-1)  # (T,B,2H)
    h_n = hn[:, :batch_size, :]                                           # (2,B,H)

    features = jnp.transpose(h_n, (1, 0, 2)).reshape(batch_size, 1, 1, -1)
    return features, lstm_output, sorted_idx


# ----------------------------- params ----------------------------------------
def init_params(key):
    ks = jax.random.split(key, 10)
    K = IMG_CH * PATCH * PATCH
    s_conv = 1.0 / np.sqrt(K)
    s_ih = 1.0 / np.sqrt(C_FEAT)
    s_hh = 1.0 / np.sqrt(N_HID)
    p = {
        "w_conv": jax.random.uniform(ks[0], (K, C_FEAT), jnp.float32, -s_conv, s_conv),
        "b_conv": jax.random.uniform(ks[1], (1, C_FEAT), jnp.float32, -s_conv, s_conv),
        # PyTorch stores weight_ih as (4H, D); we keep the transposed (D, 4H) for matmul.
        "w_ih_f": jax.random.uniform(ks[2], (C_FEAT, 4 * N_HID), jnp.float32, -s_ih, s_ih),
        "w_hh_f": jax.random.uniform(ks[3], (N_HID, 4 * N_HID), jnp.float32, -s_hh, s_hh),
        # combined bias = bias_ih + bias_hh
        "b_f": (jax.random.uniform(ks[4], (1, 4 * N_HID), jnp.float32, -s_hh, s_hh)
                + jax.random.uniform(ks[5], (1, 4 * N_HID), jnp.float32, -s_hh, s_hh)),
        "w_ih_b": jax.random.uniform(ks[6], (C_FEAT, 4 * N_HID), jnp.float32, -s_ih, s_ih),
        "w_hh_b": jax.random.uniform(ks[7], (N_HID, 4 * N_HID), jnp.float32, -s_hh, s_hh),
        "b_b": (jax.random.uniform(ks[8], (1, 4 * N_HID), jnp.float32, -s_hh, s_hh)
                + jax.random.uniform(ks[9], (1, 4 * N_HID), jnp.float32, -s_hh, s_hh)),
    }
    return p


# ----------------------------- demo -------------------------------------------
if __name__ == "__main__":
    key = jax.random.PRNGKey(0)
    k_img, k_par = jax.random.split(key)

    num_box = [3, 2]                       # B = 2 images, 5 boxes total
    S = 16                                 # size_box
    n_total = int(sum(num_box))
    stacked_images = jax.random.normal(k_img, (n_total, IMG_CH, S, S), jnp.float32)

    params = init_params(k_par)

    features, lstm_output, sorted_idx = encoder_for_detector_forward(
        stacked_images, num_box, params)

    jax.block_until_ready((features, lstm_output))

    assert features.shape == (len(num_box), 1, 1, 2 * N_HID)
    assert lstm_output.shape == (max(num_box), len(num_box), 2 * N_HID)
    assert sorted_idx.shape == (len(num_box),)
    assert bool(jnp.all(jnp.isfinite(features)))
    assert bool(jnp.all(jnp.isfinite(lstm_output)))

    print("KERNEL_OK")
</pallas_src>

<mosaic_0001>
module attributes {stable_mosaic.version = 11 : i64} {
  func.func @cnn_pool_kernel(%arg0: i32, %arg1: memref<8x16x128xbf16, #tpu.memory_space<vmem>>, %arg2: memref<128x2048xbf16, #tpu.memory_space<vmem>>, %arg3: memref<1x2048xf32, #tpu.memory_space<vmem>>, %arg4: memref<8x2048xf32, #tpu.memory_space<vmem>>) attributes {dimension_semantics = [#tpu.dimension_semantics<arbitrary>], iteration_bounds = array<i64: 1>, scalar_prefetch = 0 : i64, scratch_operands = 0 : i64, tpu.core_type = #tpu.core_type<tc>, window_params = [{pipeline_mode = #tpu.pipeline_mode<synchronous>, transform_indices = @transform_0, window_bounds = array<i64: 8, 16, 128>}, {pipeline_mode = #tpu.pipeline_mode<synchronous>, transform_indices = @transform_1, window_bounds = array<i64: 128, 2048>}, {pipeline_mode = #tpu.pipeline_mode<synchronous>, transform_indices = @transform_2, window_bounds = array<i64: 1, 2048>}, {pipeline_mode = #tpu.pipeline_mode<synchronous>, transform_indices = @transform_3, window_bounds = array<i64: 8, 2048>}]} {
    %c0 = arith.constant 0 : index
    %c0_0 = arith.constant 0 : index
    %c0_1 = arith.constant 0 : index
    %0 = vector.load %arg1[%c0, %c0_0, %c0_1] : memref<8x16x128xbf16, #tpu.memory_space<vmem>>, vector<8x16x128xbf16>
    %1 = arith.extf %0 : vector<8x16x128xbf16> to vector<8x16x128xf32>
    %cst = arith.constant dense<0.000000e+00> : vector<8x128xf32>
    %2 = vector.multi_reduction <add>, %1, %cst [1] : vector<8x16x128xf32> to vector<8x128xf32>
    %cst_2 = arith.constant 1.600000e+01 : f32
    %3 = vector.broadcast %cst_2 : f32 to vector<8x128xf32>
    %4 = arith.divf %2, %3 : vector<8x128xf32>
    %5 = arith.truncf %4 : vector<8x128xf32> to vector<8x128xbf16>
    %c0_3 = arith.constant 0 : index
    %c0_4 = arith.constant 0 : index
    %6 = vector.load %arg2[%c0_3, %c0_4] : memref<128x2048xbf16, #tpu.memory_space<vmem>>, vector<128x2048xbf16>
    %cst_5 = arith.constant dense<0.000000e+00> : vector<8x2048xf32>
    %7 = tpu.matmul %5, %6, %cst_5 {dimension_numbers = #tpu.dot_dimension_numbers<[1], [0], [0], [1], [0, 0, 1, 1], [], []>} : vector<8x128xbf16>, vector<128x2048xbf16>, vector<8x2048xf32> -> vector<8x2048xf32>
    %c0_6 = arith.constant 0 : index
    %c0_7 = arith.constant 0 : index
    %8 = vector.load %arg3[%c0_6, %c0_7] : memref<1x2048xf32, #tpu.memory_space<vmem>>, vector<1x2048xf32>
    %9 = vector.broadcast %8 : vector<1x2048xf32> to vector<8x2048xf32>
    %10 = arith.addf %7, %9 : vector<8x2048xf32>
    %c0_8 = arith.constant 0 : index
    %c0_9 = arith.constant 0 : index
    %11 = vector.load %arg4[%c0_8, %c0_9] : memref<8x2048xf32, #tpu.memory_space<vmem>>, vector<8x2048xf32>
    tpu.vector_store %arg4[%c0_8, %c0_9], %10 {strides = array<i32>} : memref<8x2048xf32, #tpu.memory_space<vmem>>, vector<8x2048xf32>,
    return
  }
  func.func @transform_0(%arg0: i32) -> (i32, i32, i32) {
    %c0_i32 = arith.constant 0 : i32
    %c0_i32_0 = arith.constant 0 : i32
    %c0_i32_1 = arith.constant 0 : i32
    %c0_i32_2 = arith.constant 0 : i32
    return %c0_i32, %c0_i32_0, %c0_i32_1 : i32, i32, i32
  }
  func.func @transform_1(%arg0: i32) -> (i32, i32) {
    %c0_i32 = arith.constant 0 : i32
    %c0_i32_0 = arith.constant 0 : i32
    %c0_i32_1 = arith.constant 0 : i32
    return %c0_i32, %c0_i32_0 : i32, i32
  }
  func.func @transform_2(%arg0: i32) -> (i32, i32) {
    %c0_i32 = arith.constant 0 : i32
    %c0_i32_0 = arith.constant 0 : i32
    %c0_i32_1 = arith.constant 0 : i32
    return %c0_i32, %c0_i32_0 : i32, i32
  }
  func.func @transform_3(%arg0: i32) -> (i32, i32) {
    %c0_i32 = arith.constant 0 : i32
    %c0_i32_0 = arith.constant 0 : i32
    %c0_i32_1 = arith.constant 0 : i32
    return %c0_i32, %c0_i32_0 : i32, i32
  }
}

</mosaic_0001>

<bundles_post_ra>
// kernel: tpu_custom_call.1
= control target key start
LH: loop header
LB: loop body
LE: loop exit
PB: predicated region body
PF: predicated region fallthrough
CT: control target
= control target key end

     0   :  { %8 = vsyncpa [#allocation3], 0  ;;  %s2118_s0 = inlined_call_operand.hbm [shape: bf16[8,16,128], index: 0, kind: input, shape index: {}]   ;;  %s2119_s1 = inlined_call_operand.hbm [shape: bf16[128,2048], index: 1, kind: input, shape index: {}]   ;;  %s2120_s2 = inlined_call_operand.hbm [shape: f32[1,2048], index: 2, kind: input, shape index: {}]   ;;  %s2121_s3 = inlined_call_operand.hbm [shape: f32[8,2048], index: 3, kind: output, shape index: {}]  }
   0x1   :  { %9 = vsyncpa [#allocation6], 0  ;;  %s28_s14 = sshll.u32 %s2119_s1, 4  ;;  %s29_s14 = int_to_ptr.hbm [resolvable:$true] %s28_s14 }
   0x2   :  { %10 = vsyncpa [#allocation4], 0  ;;  %s2040_s15 = smov [#allocation5]   ;;  %s15_s19 = sshll.u32 %s2118_s0, 4  ;;  %s16_s19 = int_to_ptr.hbm [resolvable:$true] %s15_s19 }
   0x3   :  { %s30_s16 = sshll.u32 %s2040_s15, 4  ;;  %s2041_s20 = smov 1024   ;;  %s31_s16 = int_to_ptr.vmem [resolvable:$true] %s30_s16 }
   0x4   :  { %s2042_s21 = smov 64   ;;  %s2043_s22 = smov [#allocation2]  }
   0x5   :  { %36 = dma.hbm_to_vmem [thread:$0]  %s29_s14, 16384, %s31_s16, [#allocation6], %s2041_s20, %s2041_s20, %s2042_s21  }
   0x6   :  { %s17_s23 = sshll.u32 %s2043_s22, 4  ;;  %s42_s1 = sshll.u32 %s2120_s2, 4  ;;  %s18_s23 = int_to_ptr.vmem [resolvable:$true] %s17_s23  ;;  %s43_s1 = int_to_ptr.hbm [resolvable:$true] %s42_s1 }
   0x7   :  { %s2044_s26 = smov 4   ;;  %s2045_s27 = smov [#allocation7]  }
   0x8   :  { %23 = dma.hbm_to_vmem [thread:$0]  %s16_s19, 1024, %s18_s23, [#allocation3], %s2042_s21, %s2042_s21, %s2044_s26  }
   0x9   :  { %s44_s28 = sshll.u32 %s2045_s27, 4  ;;  %s45_s28 = int_to_ptr.vmem [resolvable:$true] %s44_s28 }
   0xa   :  { %47 = dma.hbm_to_vmem [thread:$0]  %s43_s1, 256, %s45_s28, [#allocation6]  }
   0xb   :  { %2034 = dma.done.wait [#allocation3], 1024  }
   0xc   :  { %2035 = vsyncadd [#allocation3], 4294966272 }
   0xd   :  { %2036 = dma.done.wait [#allocation6], 16640  }
   0xe   :  { %2037 = vsyncadd [#allocation6], 4294950656  ;;  %v1699_v0 = vld [vmem:[#allocation5 + $0x380] sm:$0xf]  ;;  %v1873_v2 = vld [vmem:[#allocation5 + $0x384] sm:$0xf] }
   0xf   :  { %v1881_v1 = vld [vmem:[#allocation5 + $0x3bc] sm:$0xf0]  ;;  %v1701_v4 = vld [vmem:[#allocation5 + $0x3c0] sm:$0xf0]  ;;  %v1707_v5 = vld [vmem:[#allocation5 + $0x388] sm:$0xf] }
  0x10   :  { %v1700_v3 = vor.u32 %v1881_v1, %v1699_v0  ;;  %v1882_v6 = vld [vmem:[#allocation5 + $0x3c4] sm:$0xf0]  ;;  %v1704_v7 = vor.u32 %v1873_v2, %v1701_v4  ;;  %v1874_v9 = vld [vmem:[#allocation5 + $0x38c] sm:$0xf]  ;;  %v1635_v11 = vld [vmem:[#allocation5 + $0x300] sm:$0xf] }
  0x11   :  { %v1708_v8 = vor.u32 %v1882_v6, %v1707_v5  ;;  %v1709_v10 = vld [vmem:[#allocation5 + $0x3c8] sm:$0xf0]  ;;  %v1865_v13 = vld [vmem:[#allocation5 + $0x33c] sm:$0xf0]  ;;  %v1857_v14 = vld [vmem:[#allocation5 + $0x304] sm:$0xf] }
  0x12   :  { %1007 = vmatpush.bf16.msra.mxu0 %v1700_v3  ;;  %v1712_v12 = vor.u32 %v1874_v9, %v1709_v10  ;;  %v1637_v15 = vld [vmem:[#allocation5 + $0x340] sm:$0xf0]  ;;  %1020 = vmatpush.bf16.msra.mxu1 %v1704_v7  ;;  %v1636_v16 = vor.u32 %v1865_v13, %v1635_v11  ;;  %v1643_v18 = vld [vmem:[#allocation5 + $0x308] sm:$0xf]  ;;  %v1858_v20 = vld [vmem:[#allocation5 + $0x30c] sm:$0xf] }
  0x13   :  { %1033 = vmatpush.bf16.msra.mxu2 %v1708_v8  ;;  %v1640_v17 = vor.u32 %v1857_v14, %v1637_v15  ;;  %v1866_v19 = vld [vmem:[#allocation5 + $0x344] sm:$0xf0]  ;;  %v1645_v22 = vld [vmem:[#allocation5 + $0x348] sm:$0xf0]  ;;  %v1571_v23 = vld [vmem:[#allocation5 + $0x280] sm:$0xf] }
  0x14   :  { %1046 = vmatpush.bf16.msra.mxu3 %v1712_v12  ;;  %v1644_v21 = vor.u32 %v1866_v19, %v1643_v18  ;;  %v1849_v24 = vld [vmem:[#allocation5 + $0x2bc] sm:$0xf0]  ;;  %v1648_v25 = vor.u32 %v1858_v20, %v1645_v22  ;;  %v1841_v26 = vld [vmem:[#allocation5 + $0x284] sm:$0xf]  ;;  %v1579_v28 = vld [vmem:[#allocation5 + $0x288] sm:$0xf] }
  0x15   :  { %v1573_v27 = vld [vmem:[#allocation5 + $0x2c0] sm:$0xf0]  ;;  %v1572_v29 = vor.u32 %v1849_v24, %v1571_v23  ;;  %v1850_v30 = vld [vmem:[#allocation5 + $0x2c4] sm:$0xf0]  ;;  %v1842_v31 = vld [vmem:[#allocation5 + $0x28c] sm:$0xf] }
  0x16   :  { %1008 = vmatpush.bf16.msra.mxu0 %v1636_v16  ;;  %v1581_v32 = vld [vmem:[#allocation5 + $0x2c8] sm:$0xf0]  ;;  %1021 = vmatpush.bf16.msra.mxu1 %v1640_v17  ;;  %v1576_v33 = vor.u32 %v1841_v26, %v1573_v27  ;;  %v1580_v34 = vor.u32 %v1850_v30, %v1579_v28  ;;  %v1507_v35 = vld [vmem:[#allocation5 + $0x200] sm:$0xf]  ;;  %v1825_v37 = vld [vmem:[#allocation5 + $0x204] sm:$0xf] }
  0x17   :  { %1034 = vmatpush.bf16.msra.mxu2 %v1644_v21  ;;  %v1833_v36 = vld [vmem:[#allocation5 + $0x23c] sm:$0xf0]  ;;  %v1584_v38 = vor.u32 %v1842_v31, %v1581_v32  ;;  %v1509_v39 = vld [vmem:[#allocation5 + $0x240] sm:$0xf0]  ;;  %v1515_v40 = vld [vmem:[#allocation5 + $0x208] sm:$0xf] }
  0x18   :  { %1047 = vmatpush.bf16.msra.mxu3 %v1648_v25  ;;  %v1834_v41 = vld [vmem:[#allocation5 + $0x244] sm:$0xf0]  ;;  %v1826_v42 = vld [vmem:[#allocation5 + $0x20c] sm:$0xf]  ;;  %v1508_v44 = vor.u32 %v1833_v36, %v1507_v35  ;;  %v1512_v45 = vor.u32 %v1825_v37, %v1509_v39  ;;  %v1443_v47 = vld [vmem:[#allocation5 + $0x180] sm:$0xf] }
  0x19   :  { %v1517_v43 = vld [vmem:[#allocation5 + $0x248] sm:$0xf0]  ;;  %v1516_v46 = vor.u32 %v1834_v41, %v1515_v40  ;;  %v1817_v48 = vld [vmem:[#allocation5 + $0x1bc] sm:$0xf0]  ;;  %v1809_v49 = vld [vmem:[#allocation5 + $0x184] sm:$0xf] }
  0x1a   :  { %1009 = vmatpush.bf16.msra.mxu0 %v1572_v29  ;;  %1022 = vmatpush.bf16.msra.mxu1 %v1576_v33  ;;  %v1520_v50 = vor.u32 %v1826_v42, %v1517_v43  ;;  %v1445_v51 = vld [vmem:[#allocation5 + $0x1c0] sm:$0xf0]  ;;  %v1451_v52 = vld [vmem:[#allocation5 + $0x188] sm:$0xf]  ;;  %v1810_v54 = vld [vmem:[#allocation5 + $0x18c] sm:$0xf]  ;;  %v1444_v56 = vor.u32 %v1817_v48, %v1443_v47 }
  0x1b   :  { %1035 = vmatpush.bf16.msra.mxu2 %v1580_v34  ;;  %v1818_v53 = vld [vmem:[#allocation5 + $0x1c4] sm:$0xf0]  ;;  %v1453_v55 = vld [vmem:[#allocation5 + $0x1c8] sm:$0xf0]  ;;  %v1448_v57 = vor.u32 %v1809_v49, %v1445_v51  ;;  %v1379_v59 = vld [vmem:[#allocation5 + $0x100] sm:$0xf] }
  0x1c   :  { %1048 = vmatpush.bf16.msra.mxu3 %v1584_v38  ;;  %v1452_v58 = vor.u32 %v1818_v53, %v1451_v52  ;;  %v1801_v60 = vld [vmem:[#allocation5 + $0x13c] sm:$0xf0]  ;;  %v1793_v61 = vld [vmem:[#allocation5 + $0x104] sm:$0xf]  ;;  %v1456_v62 = vor.u32 %v1810_v54, %v1453_v55  ;;  %v1387_v0 = vld [vmem:[#allocation5 + $0x108] sm:$0xf] }
  0x1d   :  { %v1381_v63 = vld [vmem:[#allocation5 + $0x140] sm:$0xf0]  ;;  %v1802_v1 = vld [vmem:[#allocation5 + $0x144] sm:$0xf0]  ;;  %v1794_v2 = vld [vmem:[#allocation5 + $0x10c] sm:$0xf]  ;;  %v1380_v4 = vor.u32 %v1801_v60, %v1379_v59 }
  0x1e   :  { %1010 = vmatpush.bf16.msra.mxu0 %v1508_v44  ;;  %1023 = vmatpush.bf16.msra.mxu1 %v1512_v45  ;;  %v1389_v3 = vld [vmem:[#allocation5 + $0x148] sm:$0xf0]  ;;  %v1384_v5 = vor.u32 %v1793_v61, %v1381_v63  ;;  %v1388_v6 = vor.u32 %v1802_v1, %v1387_v0  ;;  %v1315_v7 = vld [vmem:[#allocation5 + $0x80] sm:$0xf]  ;;  %v1777_v9 = vld [vmem:[#allocation5 + $0x84] sm:$0xf] }
  0x1f   :  { %1036 = vmatpush.bf16.msra.mxu2 %v1516_v46  ;;  %v1785_v8 = vld [vmem:[#allocation5 + $0xbc] sm:$0xf0]  ;;  %v1392_v10 = vor.u32 %v1794_v2, %v1389_v3  ;;  %v1317_v11 = vld [vmem:[#allocation5 + $0xc0] sm:$0xf0]  ;;  %v1323_v12 = vld [vmem:[#allocation5 + $0x88] sm:$0xf] }
  0x20   :  { %1049 = vmatpush.bf16.msra.mxu3 %v1520_v50  ;;  %v1786_v13 = vld [vmem:[#allocation5 + $0xc4] sm:$0xf0]  ;;  %v1778_v14 = vld [vmem:[#allocation5 + $0x8c] sm:$0xf]  ;;  %v1316_v16 = vor.u32 %v1785_v8, %v1315_v7  ;;  %v1251_v17 = vld [vmem:[#allocation5] sm:$0xf]  ;;  %v1320_v20 = vor.u32 %v1777_v9, %v1317_v11 }
  0x21   :  { %v1325_v15 = vld [vmem:[#allocation5 + $0xc8] sm:$0xf0]  ;;  %v1769_v18 = vld [vmem:[#allocation5 + $0x3c] sm:$0xf0]  ;;  %v1761_v19 = vld [vmem:[#allocation5 + $0x4] sm:$0xf]  ;;  %v1324_v21 = vor.u32 %v1786_v13, %v1323_v12 }
  0x22   :  { %1011 = vmatpush.bf16.msra.mxu0 %v1444_v56  ;;  %1024 = vmatpush.bf16.msra.mxu1 %v1448_v57  ;;  %v1253_v22 = vld [vmem:[#allocation5 + $0x40] sm:$0xf0]  ;;  %v1259_v23 = vld [vmem:[#allocation5 + $0x8] sm:$0xf]  ;;  %v1328_v25 = vor.u32 %v1778_v14, %v1325_v15  ;;  %v1762_v26 = vld [vmem:[#allocation5 + $0xc] sm:$0xf]  ;;  %v1252_v32 = vor.u32 %v1769_v18, %v1251_v17 }
  0x23   :  { %1037 = vmatpush.bf16.msra.mxu2 %v1452_v58  ;;  %v1770_v24 = vld [vmem:[#allocation5 + $0x44] sm:$0xf0]  ;;  %v1261_v27 = vld [vmem:[#allocation5 + $0x48] sm:$0xf0]  ;;  %v1715_v28 = vld [vmem:[#allocation5 + $0x390] sm:$0xf]  ;;  %v1256_v36 = vor.u32 %v1761_v19, %v1253_v22 }
  0x24   :  { %1050 = vmatpush.bf16.msra.mxu3 %v1456_v62  ;;  %v1883_v29 = vld [vmem:[#allocation5 + $0x3cc] sm:$0xf0]  ;;  %v1875_v30 = vld [vmem:[#allocation5 + $0x394] sm:$0xf]  ;;  %v1723_v33 = vld [vmem:[#allocation5 + $0x398] sm:$0xf]  ;;  %v1260_v37 = vor.u32 %v1770_v24, %v1259_v23  ;;  %v1264_v41 = vor.u32 %v1762_v26, %v1261_v27 }
  0x25   :  { %v1717_v31 = vld [vmem:[#allocation5 + $0x3d0] sm:$0xf0]  ;;  %v1884_v34 = vld [vmem:[#allocation5 + $0x3d4] sm:$0xf0]  ;;  %v1876_v35 = vld [vmem:[#allocation5 + $0x39c] sm:$0xf]  ;;  %v1716_v42 = vor.u32 %v1883_v29, %v1715_v28 }
  0x26   :  { %1012 = vmatpush.bf16.msra.mxu0 %v1380_v4  ;;  %1025 = vmatpush.bf16.msra.mxu1 %v1384_v5  ;;  %v1725_v38 = vld [vmem:[#allocation5 + $0x3d8] sm:$0xf0]  ;;  %v1651_v39 = vld [vmem:[#allocation5 + $0x310] sm:$0xf]  ;;  %v1859_v43 = vld [vmem:[#allocation5 + $0x314] sm:$0xf]  ;;  %v1720_v46 = vor.u32 %v1875_v30, %v1717_v31  ;;  %v1724_v47 = vor.u32 %v1884_v34, %v1723_v33 }
  0x27   :  { %1038 = vmatpush.bf16.msra.mxu2 %v1388_v6  ;;  %v1867_v40 = vld [vmem:[#allocation5 + $0x34c] sm:$0xf0]  ;;  %v1653_v44 = vld [vmem:[#allocation5 + $0x350] sm:$0xf0]  ;;  %v1659_v45 = vld [vmem:[#allocation5 + $0x318] sm:$0xf]  ;;  %v1728_v51 = vor.u32 %v1876_v35, %v1725_v38 }
  0x28   :  { %1051 = vmatpush.bf16.msra.mxu3 %v1392_v10  ;;  %v1868_v48 = vld [vmem:[#allocation5 + $0x354] sm:$0xf0]  ;;  %v1860_v49 = vld [vmem:[#allocation5 + $0x31c] sm:$0xf]  ;;  %v1587_v52 = vld [vmem:[#allocation5 + $0x290] sm:$0xf]  ;;  %v1652_v58 = vor.u32 %v1867_v40, %v1651_v39  ;;  %v1656_v62 = vor.u32 %v1859_v43, %v1653_v44 }
  0x29   :  { %v1661_v50 = vld [vmem:[#allocation5 + $0x358] sm:$0xf0]  ;;  %v1851_v53 = vld [vmem:[#allocation5 + $0x2cc] sm:$0xf0]  ;;  %v1843_v54 = vld [vmem:[#allocation5 + $0x294] sm:$0xf]  ;;  %v1660_v63 = vor.u32 %v1868_v48, %v1659_v45 }
  0x2a   :  { %1013 = vmatpush.bf16.msra.mxu0 %v1316_v16  ;;  %1026 = vmatpush.bf16.msra.mxu1 %v1320_v20  ;;  %v1589_v55 = vld [vmem:[#allocation5 + $0x2d0] sm:$0xf0]  ;;  %v1595_v56 = vld [vmem:[#allocation5 + $0x298] sm:$0xf]  ;;  %v1844_v59 = vld [vmem:[#allocation5 + $0x29c] sm:$0xf]  ;;  %v1664_v3 = vor.u32 %v1860_v49, %v1661_v50  ;;  %v1588_v6 = vor.u32 %v1851_v53, %v1587_v52 }
  0x2b   :  { %1039 = vmatpush.bf16.msra.mxu2 %v1324_v21  ;;  %v1852_v57 = vld [vmem:[#allocation5 + $0x2d4] sm:$0xf0]  ;;  %v1597_v60 = vld [vmem:[#allocation5 + $0x2d8] sm:$0xf0]  ;;  %v2077_v61 = vld [vmem:[#allocation5 + $0x210] sm:$0xf]  ;;  %v1592_v7 = vor.u32 %v1843_v54, %v1589_v55 }
  0x2c   :  { %1052 = vmatpush.bf16.msra.mxu3 %v1328_v25  ;;  %v2079_v0 = vld [vmem:[#allocation5 + $0x24c] sm:$0xf0]  ;;  %v2081_v1 = vld [vmem:[#allocation5 + $0x214] sm:$0xf]  ;;  %v2085_v4 = vld [vmem:[#allocation5 + $0x218] sm:$0xf]  ;;  %v1596_v8 = vor.u32 %v1852_v57, %v1595_v56  ;;  %v1600_v9 = vor.u32 %v1844_v59, %v1597_v60 }
  0x2d   :  { %v2083_v2 = vld [vmem:[#allocation5 + $0x250] sm:$0xf0]  ;;  %v2087_v5 = vld [vmem:[#allocation5 + $0x254] sm:$0xf0]  ;;  %v1524_v10 = vor.u32 %v2079_v0, %v2077_v61  ;;  %v1890_v12 = vld [vmem:[#allocation2] sm:$0xff]   ;;  %vm351_vm1 = vcmask 1041409  }
  0x2e   :  { %1014 = vmatpush.bf16.msra.mxu0 %v1252_v32  ;;  %1027 = vmatpush.bf16.msra.mxu1 %v1256_v36  ;;  %v1528_v11 = vor.u32 %v2081_v1, %v2083_v2  ;;  %v1921_v13 = vld [vmem:[#allocation2 + $0x8] sm:$0xff]   ;;  %v1532_v14 = vor.u32 %v2087_v5, %v2085_v4  ;;  %v1891_v15 = vunpack.c.l.bf16 %v1890_v12  ;;  %v1892_v16 = vunpack.c.h.bf16 %v1890_v12  ;;  %v1922_v18 = vld [vmem:[#allocation2 + $0x10] sm:$0xff]   ;;  %v1923_v19 = vld [vmem:[#allocation2 + $0x18] sm:$0xff]   ;;  %s2047_s0 = smov [#allocation8]   ;;  %s1238_s4 = sshll.u32 %s2121_s3, 4  ;;  %s1239_s4 = int_to_ptr.hbm [resolvable:$true] %s1238_s4 }
  0x2f   :  { %1040 = vmatpush.bf16.msra.mxu2 %v1260_v37  ;;  %v1895_v17 = vunpack.c.l.bf16 %v1921_v13  ;;  %v1924_v20 = vld [vmem:[#allocation2 + $0x20] sm:$0xff]   ;;  %v1896_v21 = vunpack.c.h.bf16 %v1921_v13  ;;  %v1899_v22 = vunpack.c.l.bf16 %v1922_v18  ;;  %v1900_v23 = vunpack.c.h.bf16 %v1922_v18  ;;  %v1925_v25 = vld [vmem:[#allocation2 + $0x28] sm:$0xff]   ;;  %v1926_v26 = vld [vmem:[#allocation2 + $0x30] sm:$0xff]   ;;  %s1236_s2 = sshll.u32 %s2047_s0, 4  ;;  %s1237_s2 = int_to_ptr.vmem [resolvable:$true] %s1236_s2 }
  0x30   :  { %1053 = vmatpush.bf16.msra.mxu3 %v1264_v41  ;;  %v1903_v24 = vunpack.c.l.bf16 %v1923_v19  ;;  %v1927_v27 = vld [vmem:[#allocation2 + $0x38] sm:$0xff]   ;;  %v1904_v30 = vunpack.c.h.bf16 %v1923_v19  ;;  %v1907_v31 = vunpack.c.l.bf16 %v1924_v20  ;;  %v1908_v32 = vunpack.c.h.bf16 %v1924_v20  ;;  %v1459_v34 = vld [vmem:[#allocation5 + $0x190] sm:$0xf]  ;;  %v1811_v40 = vld [vmem:[#allocation5 + $0x194] sm:$0xf] }
  0x31   :  { %v1828_v28 = vld [vmem:[#allocation5 + $0x21c] sm:$0xf]  ;;  %v1911_v33 = vunpack.c.l.bf16 %v1925_v25  ;;  %v1819_v35 = vld [vmem:[#allocation5 + $0x1cc] sm:$0xf0]  ;;  %v1912_v36 = vunpack.c.h.bf16 %v1925_v25  ;;  %v1915_v37 = vunpack.c.l.bf16 %v1926_v26  ;;  %v1916_v38 = vunpack.c.h.bf16 %v1926_v26  ;;  %v1461_v41 = vld [vmem:[#allocation5 + $0x1d0] sm:$0xf0] }
  0x32   :  { %1059 = vmatpush.bf16.msrb.mxu0 %v1716_v42  ;;  %1072 = vmatpush.bf16.msrb.mxu1 %v1720_v46  ;;  %v1533_v29 = vld [vmem:[#allocation5 + $0x258] sm:$0xf0]  ;;  %v1919_v39 = vunpack.c.l.bf16 %v1927_v27  ;;  %v1467_v42 = vld [vmem:[#allocation5 + $0x198] sm:$0xf]  ;;  %v1920_v43 = vunpack.c.h.bf16 %v1927_v27  ;;  %v92_v44 = vadd.f32 %v1892_v16, %v1891_v15  ;;  %v99_v45 = vadd.f32 %v1896_v21, %v1895_v17  ;;  %v1395_v54 = vld [vmem:[#allocation5 + $0x110] sm:$0xf] }
  0x33   :  { %1085 = vmatpush.bf16.msrb.mxu2 %v1724_v47  ;;  %v106_v46 = vadd.f32 %v1900_v23, %v1899_v22  ;;  %v1536_v47 = vor.u32 %v1828_v28, %v1533_v29  ;;  %v1820_v48 = vld [vmem:[#allocation5 + $0x1d4] sm:$0xf0]  ;;  %v1812_v49 = vld [vmem:[#allocation5 + $0x19c] sm:$0xf]  ;;  %v120_v52 = vadd.f32 %v1908_v32, %v1907_v31  ;;  %v1460_v53 = vor.u32 %v1819_v35, %v1459_v34  ;;  %v1803_v55 = vld [vmem:[#allocation5 + $0x14c] sm:$0xf0] }
  0x34   :  { %1098 = vmatpush.bf16.msrb.mxu3 %v1728_v51  ;;  %v1469_v50 = vld [vmem:[#allocation5 + $0x1d8] sm:$0xf0]  ;;  %v113_v51 = vadd.f32 %v1904_v30, %v1903_v24  ;;  %v1795_v56 = vld [vmem:[#allocation5 + $0x114] sm:$0xf]  ;;  %v127_v57 = vadd.f32 %v1912_v36, %v1911_v33  ;;  %v1464_v59 = vor.u32 %v1811_v40, %v1461_v41  ;;  %v1403_v61 = vld [vmem:[#allocation5 + $0x118] sm:$0xf]  ;;  %v141_v0 = vadd.f32 %v1920_v43, %v1919_v39 }
  0x35   :  { %v1397_v60 = vld [vmem:[#allocation5 + $0x150] sm:$0xf0]  ;;  %v1468_v1 = vor.u32 %v1820_v48, %v1467_v42  ;;  %v1804_v2 = vld [vmem:[#allocation5 + $0x154] sm:$0xf0]  ;;  %v121_v5 = vrot.slane %v120_v52, 4  ;;  %v2046_v34 = vmov 16.0  }
  0x36   :  { %1060 = vmatpush.bf16.msrb.mxu0 %v1652_v58  ;;  %1073 = vmatpush.bf16.msrb.mxu1 %v1656_v62  ;;  %v134_v58 = vadd.f32 %v1916_v38, %v1915_v37  ;;  %v93_v62 = vrot.slane %v92_v44, 4  ;;  %v114_v4 = vrot.slane %v113_v51, 4  ;;  %v1405_v12 = vld [vmem:[#allocation5 + $0x158] sm:$0xf0]  ;;  %v1404_v15 = vor.u32 %v1804_v2, %v1403_v61  ;;  %v1331_v29 = vld [vmem:[#allocation5 + $0x90] sm:$0xf] }
  0x37   :  { %1086 = vmatpush.bf16.msrb.mxu2 %v1660_v63  ;;  %v100_v63 = vrot.slane %v99_v45, 4  ;;  %v142_v18 = vrot.slane %v141_v0, 4  ;;  %v122_v19 = vadd.f32 %v121_v5, %v120_v52  ;;  %v1787_v30 = vld [vmem:[#allocation5 + $0xcc] sm:$0xf0]  ;;  %v1779_v31 = vld [vmem:[#allocation5 + $0x94] sm:$0xf]  ;;  %1936 = vrcp.f32 %v2046_v34 }
  0x38   :  { %1099 = vmatpush.bf16.msrb.mxu3 %v1664_v3  ;;  %v107_v3 = vrot.slane %v106_v46, 4  ;;  %v135_v13 = vrot.slane %v134_v58, 4  ;;  %v94_v16 = vadd.f32 %v93_v62, %v92_v44  ;;  %v1333_v35 = vld [vmem:[#allocation5 + $0xd0] sm:$0xf0]  ;;  %v1339_v36 = vld [vmem:[#allocation5 + $0x98] sm:$0xf]  ;;  %v1332_v41 = vor.u32 %v1787_v30, %v1331_v29 }
  0x39   :  { %v101_v17 = vadd.f32 %v100_v63, %v99_v45  ;;  %v143_v24 = vadd.f32 %v142_v18, %v141_v0  ;;  %v123_v28 = vrot.slane %v122_v19, 2  ;;  %v1788_v39 = vld [vmem:[#allocation5 + $0xd4] sm:$0xf0]  ;;  %v1336_v42 = vor.u32 %v1779_v31, %v1333_v35  ;;  %v1780_v44 = vld [vmem:[#allocation5 + $0x9c] sm:$0xf] }
  0x3a   :  { %1061 = vmatpush.bf16.msrb.mxu0 %v1588_v6  ;;  %1074 = vmatpush.bf16.msrb.mxu1 %v1592_v7  ;;  %v1472_v6 = vor.u32 %v1812_v49, %v1469_v50  ;;  %v1396_v7 = vor.u32 %v1803_v55, %v1395_v54  ;;  %v136_v22 = vadd.f32 %v135_v13, %v134_v58  ;;  %v95_v23 = vrot.slane %v94_v16, 2  ;;  %v1341_v45 = vld [vmem:[#allocation5 + $0xd8] sm:$0xf0]  ;;  %v1267_v50 = vld [vmem:[#allocation5 + $0x10] sm:$0xf] }
  0x3b   :  { %1087 = vmatpush.bf16.msrb.mxu2 %v1596_v8  ;;  %v1400_v8 = vor.u32 %v1795_v56, %v1397_v60  ;;  %v102_v25 = vrot.slane %v101_v17, 2  ;;  %v144_v38 = vrot.slane %v143_v24, 2  ;;  %v1340_v43 = vor.u32 %v1788_v39, %v1339_v36  ;;  %v1763_v52 = vld [vmem:[#allocation5 + $0x14] sm:$0xf]  ;;  %v1772_v58 = vld [vmem:[#allocation5 + $0x54] sm:$0xf0] }
  0x3c   :  { %1100 = vmatpush.bf16.msrb.mxu3 %v1600_v9  ;;  %v1796_v9 = vld [vmem:[#allocation5 + $0x11c] sm:$0xf]  ;;  %v137_v33 = vrot.slane %v136_v22, 2  ;;  %v96_v37 = vadd.f32 %v95_v23, %v94_v16  ;;  %v124_v48 = vadd.f32 %v123_v28, %v122_v19  ;;  %v1344_v49 = vor.u32 %v1780_v44, %v1341_v45  ;;  %v1269_v56 = vld [vmem:[#allocation5 + $0x50] sm:$0xf0] }
  0x3d   :  { %v1408_v20 = vor.u32 %v1796_v9, %v1405_v12  ;;  %v103_v40 = vadd.f32 %v102_v25, %v101_v17  ;;  %v1272_v60 = vor.u32 %v1763_v52, %v1269_v56  ;;  %v1764_v62 = vld [vmem:[#allocation5 + $0x1c] sm:$0xf]  ;;  %v1937_v0 = vpop.eup %1936  ;;  %vm353_vm2 = vcmask 1042434   ;;  %v1885_v52 = vld [vmem:[#allocation5 + $0x3dc] sm:$0xf0] }
  0x3e   :  { %1062 = vmatpush.bf16.msrb.mxu0 %v1524_v10  ;;  %1075 = vmatpush.bf16.msrb.mxu1 %v1528_v11  ;;  %v128_v10 = vrot.slane %v127_v57, 4  ;;  %v108_v11 = vadd.f32 %v107_v3, %v106_v46  ;;  %v138_v54 = vadd.f32 %v137_v33, %v136_v22  ;;  %v1277_v63 = vld [vmem:[#allocation5 + $0x58] sm:$0xf0]  ;;  %v97_v2 = vrot.slane %v96_v37, 1  ;;  %v1739_v56 = vld [vmem:[#allocation5 + $0x3a8] sm:$0xf] }
  0x3f   :  { %1088 = vmatpush.bf16.msrb.mxu2 %v1532_v14  ;;  %v115_v14 = vadd.f32 %v114_v4, %v113_v51  ;;  %v1771_v51 = vld [vmem:[#allocation5 + $0x4c] sm:$0xf0]  ;;  %v104_v3 = vrot.slane %v103_v40, 1  ;;  %v149_v4 = vmul.f32 16.0, %v1937_v0  ;;  %vm153_vm0 = vweird.f32 %v1937_v0 }
  0x40   :  { %1101 = vmatpush.bf16.msrb.mxu3 %v1536_v47  ;;  %v129_v21 = vadd.f32 %v128_v10, %v127_v57  ;;  %v109_v26 = vrot.slane %v108_v11, 2  ;;  %v1268_v55 = vor.u32 %v1771_v51, %v1267_v50  ;;  %v1275_v57 = vld [vmem:[#allocation5 + $0x18] sm:$0xf]  ;;  %v139_v9 = vrot.slane %v138_v54, 1  ;;  %v1731_v51 = vld [vmem:[#allocation5 + $0x3a0] sm:$0xf] }
  0x41   :  { %v116_v27 = vrot.slane %v115_v14, 2  ;;  %v1276_v61 = vor.u32 %v1772_v58, %v1275_v57  ;;  %v150_v10 = vsub.f32 1.0, %v149_v4  ;;  %v98_v13 = vadd.f32 %v97_v2, %v96_v37  ;;  %v1886_v58 = vld [vmem:[#allocation5 + $0x3e4] sm:$0xf0]  ;;  %v1869_v2 = vld [vmem:[#allocation5 + $0x35c] sm:$0xf0] }
  0x42   :  { %1063 = vmatpush.bf16.msrb.mxu0 %v1460_v53  ;;  %1076 = vmatpush.bf16.msrb.mxu1 %v1464_v59  ;;  %v130_v32 = vrot.slane %v129_v21, 2  ;;  %v110_v46 = vadd.f32 %v109_v26, %v108_v11  ;;  %v145_v59 = vadd.f32 %v144_v38, %v143_v24  ;;  %v140_v19 = vadd.f32 %v139_v9, %v138_v54  ;;  %v1877_v54 = vld [vmem:[#allocation5 + $0x3a4] sm:$0xf]  ;;  %v1862_v9 = vld [vmem:[#allocation5 + $0x32c] sm:$0xf] }
  0x43   :  { %1089 = vmatpush.bf16.msrb.mxu2 %v1468_v1  ;;  %v117_v47 = vadd.f32 %v116_v27, %v115_v14  ;;  %v1280_v1 = vor.u32 %v1764_v62, %v1277_v63  ;;  %v151_v16 = vmul.f32 %v1937_v0, %v150_v10  ;;  %vm355_vm3 = vcmask 1043459  }
  0x44   :  { %1102 = vmatpush.bf16.msrb.mxu3 %v1472_v6  ;;  %v131_v53 = vadd.f32 %v130_v32, %v129_v21  ;;  %v111_v5 = vrot.slane %v110_v46, 1  ;;  %v146_v12 = vrot.slane %v145_v59, 1  ;;  %vm357_vm4 = vcmask 1044484  }
  0x45   :  { %v118_v6 = vrot.slane %v117_v47, 1  ;;  %v152_v21 = vadd.f32 %v1937_v0, %v151_v16  ;;  %vm359_vm5 = vcmask 1045509   ;;  %vm361_vm6 = vcmask 1046534   ;;  %v1853_v16 = vld [vmem:[#allocation5 + $0x2dc] sm:$0xf0] }
  0x46   :  { %1064 = vmatpush.bf16.msrb.mxu0 %v1396_v7  ;;  %1077 = vmatpush.bf16.msrb.mxu1 %v1400_v8  ;;  %v125_v7 = vrot.slane %v124_v48, 1  ;;  %v132_v8 = vrot.slane %v131_v53, 1  ;;  %v112_v17 = vadd.f32 %v111_v5, %v110_v46  ;;  %vm363_vm7 = vcmask 1047559   ;;  %v1861_v5 = vld [vmem:[#allocation5 + $0x324] sm:$0xf] }
  0x47   :  { %1090 = vmatpush.bf16.msrb.mxu2 %v1404_v15  ;;  %v105_v15 = vadd.f32 %v104_v3, %v103_v40  ;;  %v119_v18 = vadd.f32 %v118_v6, %v117_v47  ;;  %v154_v22 = vsel %vm153_vm0, %v1937_v0, %v152_v21  ;;  %v1732_v63 = vor.u32 %v1885_v52, %v1731_v51  ;;  %v1669_v6 = vld [vmem:[#allocation5 + $0x360] sm:$0xf0]  ;;  %v1846_v21 = vld [vmem:[#allocation5 + $0x2ac] sm:$0xf] }
  0x48   :  { %1103 = vmatpush.bf16.msrb.mxu3 %v1408_v20  ;;  %v126_v11 = vadd.f32 %v125_v7, %v124_v48  ;;  %v133_v14 = vadd.f32 %v132_v8, %v131_v53  ;;  %v147_v20 = vadd.f32 %v146_v12, %v145_v59  ;;  %v155_v23 = vmul.f32 %v154_v22, %v98_v13  ;;  %v1878_v59 = vld [vmem:[#allocation5 + $0x3ac] sm:$0xf]  ;;  %v1675_v7 = vld [vmem:[#allocation5 + $0x328] sm:$0xf] }
  0x49   :  { %v156_v24 = vmul.f32 %v154_v22, %v105_v15  ;;  %v157_v25 = vmul.f32 %v154_v22, %v112_v17  ;;  %v158_v26 = vmul.f32 %v154_v22, %v119_v18  ;;  %v161_v29 = vmul.f32 %v154_v22, %v140_v19  ;;  %v1870_v8 = vld [vmem:[#allocation5 + $0x364] sm:$0xf0]  ;;  %v1677_v12 = vld [vmem:[#allocation5 + $0x368] sm:$0xf0]  ;;  %v1603_v15 = vld [vmem:[#allocation5 + $0x2a0] sm:$0xf] }
  0x4a   :  { %1065 = vmatpush.bf16.msrb.mxu0 %v1332_v41  ;;  %1078 = vmatpush.bf16.msrb.mxu1 %v1336_v42  ;;  %v159_v27 = vmul.f32 %v154_v22, %v126_v11  ;;  %v160_v28 = vmul.f32 %v154_v22, %v133_v14  ;;  %v162_v30 = vmul.f32 %v154_v22, %v147_v20  ;;  %v1845_v11 = vld [vmem:[#allocation5 + $0x2a4] sm:$0xf]  ;;  %v1611_v19 = vld [vmem:[#allocation5 + $0x2a8] sm:$0xf]  ;;  %v1613_v22 = vld [vmem:[#allocation5 + $0x2e8] sm:$0xf0] }
  0x4b   :  { %1091 = vmatpush.bf16.msrb.mxu2 %v1340_v43  ;;  %v163_v31 = vpack.c.bf16 %v155_v23, %v155_v23  ;;  %v164_v32 = vpack.c.bf16 %v156_v24, %v156_v24  ;;  %v165_v33 = vpack.c.bf16 %v157_v25, %v157_v25  ;;  %v166_v34 = vpack.c.bf16 %v158_v26, %v158_v26  ;;  %v1605_v14 = vld [vmem:[#allocation5 + $0x2e0] sm:$0xf0]  ;;  %v1854_v20 = vld [vmem:[#allocation5 + $0x2e4] sm:$0xf0]  ;;  %v1539_v25 = vld [vmem:[#allocation5 + $0x220] sm:$0xf] }
  0x4c   :  { %1104 = vmatpush.bf16.msrb.mxu3 %v1344_v49  ;;  %v167_v35 = vpack.c.bf16 %v159_v27, %v159_v27  ;;  %v168_v36 = vpack.c.bf16 %v160_v28, %v160_v28  ;;  %v169_v37 = vpack.c.bf16 %v161_v29, %v161_v29  ;;  %v170_v38 = vpack.c.bf16 %v162_v30, %v162_v30  ;;  %v1837_v26 = vld [vmem:[#allocation5 + $0x25c] sm:$0xf0]  ;;  %v1829_v29 = vld [vmem:[#allocation5 + $0x224] sm:$0xf] }
  0x4d   :  { %v343_v39 = vunpack.c.l.b16 %v163_v31  ;;  %v344_v40 = vunpack.c.l.b16 %v164_v32  ;;  %v345_v41 = vunpack.c.l.b16 %v165_v33  ;;  %v346_v42 = vunpack.c.l.b16 %v166_v34  ;;  %v1541_v30 = vld [vmem:[#allocation5 + $0x260] sm:$0xf0]  ;;  %v1547_v31 = vld [vmem:[#allocation5 + $0x228] sm:$0xf]  ;;  %v1830_v33 = vld [vmem:[#allocation5 + $0x22c] sm:$0xf] }
  0x4e   :  { %1066 = vmatpush.bf16.msrb.mxu0 %v1268_v55  ;;  %1079 = vmatpush.bf16.msrb.mxu1 %v1272_v60  ;;  %v347_v43 = vunpack.c.l.b16 %v167_v35  ;;  %v348_v44 = vunpack.c.l.b16 %v168_v36  ;;  %v349_v46 = vunpack.c.l.b16 %v169_v37  ;;  %v350_v48 = vunpack.c.l.b16 %v170_v38  ;;  %v1733_v55 = vld [vmem:[#allocation5 + $0x3e0] sm:$0xf0]  ;;  %v1741_v60 = vld [vmem:[#allocation5 + $0x3e8] sm:$0xf0]  ;;  %v1838_v32 = vld [vmem:[#allocation5 + $0x264] sm:$0xf0] }
  0x4f   :  { %1092 = vmatpush.bf16.msrb.mxu2 %v1276_v61  ;;  %v352_v45 = vsel %vm351_vm1, %v344_v40, %v343_v39  ;;  %v1736_v0 = vor.u32 %v1877_v54, %v1733_v55  ;;  %v1740_v3 = vor.u32 %v1886_v58, %v1739_v56  ;;  %v1744_v4 = vor.u32 %v1878_v59, %v1741_v60  ;;  %v1549_v34 = vld [vmem:[#allocation5 + $0x268] sm:$0xf0]  ;;  %v1475_v37 = vld [vmem:[#allocation5 + $0x1a0] sm:$0xf]  ;;  %v1413_v54 = vld [vmem:[#allocation5 + $0x160] sm:$0xf0] }
  0x50   :  { %1105 = vmatpush.bf16.msrb.mxu3 %v1280_v1  ;;  %v354_v47 = vsel %vm353_vm2, %v345_v41, %v352_v45  ;;  %v1667_v1 = vld [vmem:[#allocation5 + $0x320] sm:$0xf]  ;;  %v1672_v13 = vor.u32 %v1861_v5, %v1669_v6  ;;  %v1676_v17 = vor.u32 %v1870_v8, %v1675_v7  ;;  %v1680_v18 = vor.u32 %v1862_v9, %v1677_v12  ;;  %v1813_v41 = vld [vmem:[#allocation5 + $0x1a4] sm:$0xf]  ;;  %v1814_v45 = vld [vmem:[#allocation5 + $0x1ac] sm:$0xf] }
  0x51   :  { %v356_v49 = vsel %vm355_vm3, %v346_v42, %v354_v47  ;;  %v1668_v10 = vor.u32 %v1869_v2, %v1667_v1  ;;  %v1604_v23 = vor.u32 %v1853_v16, %v1603_v15  ;;  %v1608_v24 = vor.u32 %v1845_v11, %v1605_v14  ;;  %v1821_v38 = vld [vmem:[#allocation5 + $0x1dc] sm:$0xf0]  ;;  %v1477_v42 = vld [vmem:[#allocation5 + $0x1e0] sm:$0xf0]  ;;  %v1419_v55 = vld [vmem:[#allocation5 + $0x128] sm:$0xf] }
  0x52   :  { %v358_v50 = vsel %vm357_vm4, %v347_v43, %v356_v49  ;;  %v1612_v27 = vor.u32 %v1854_v20, %v1611_v19  ;;  %v1616_v28 = vor.u32 %v1846_v21, %v1613_v22  ;;  %v1540_v35 = vor.u32 %v1837_v26, %v1539_v25  ;;  %v1483_v43 = vld [vmem:[#allocation5 + $0x1a8] sm:$0xf]  ;;  %v1411_v49 = vld [vmem:[#allocation5 + $0x120] sm:$0xf]  ;;  %v1421_v58 = vld [vmem:[#allocation5 + $0x168] sm:$0xf0] }
  0x53   :  { %v360_v53 = vsel %vm359_vm5, %v348_v44, %v358_v50  ;;  %v1544_v36 = vor.u32 %v1829_v29, %v1541_v30  ;;  %v1548_v39 = vor.u32 %v1838_v32, %v1547_v31  ;;  %v1552_v40 = vor.u32 %v1830_v33, %v1549_v34  ;;  %v1822_v44 = vld [vmem:[#allocation5 + $0x1e4] sm:$0xf0]  ;;  %v1805_v50 = vld [vmem:[#allocation5 + $0x15c] sm:$0xf0]  ;;  %v1781_v2 = vld [vmem:[#allocation5 + $0xa4] sm:$0xf] }
  0x54   :  { %v362_v57 = vsel %vm361_vm6, %v349_v46, %v360_v53  ;;  %v1485_v46 = vld [vmem:[#allocation5 + $0x1e8] sm:$0xf0]  ;;  %v1476_v47 = vor.u32 %v1821_v38, %v1475_v37  ;;  %v1484_v51 = vor.u32 %v1822_v44, %v1483_v43  ;;  %v1797_v53 = vld [vmem:[#allocation5 + $0x124] sm:$0xf]  ;;  %v1806_v56 = vld [vmem:[#allocation5 + $0x164] sm:$0xf0]  ;;  %v1412_v59 = vor.u32 %v1805_v50, %v1411_v49 }
  0x55   :  { %v364_v61 = vsel %vm363_vm7, %v350_v48, %v362_v57  ;;  %v1480_v48 = vor.u32 %v1813_v41, %v1477_v42  ;;  %v1488_v52 = vor.u32 %v1814_v45, %v1485_v46  ;;  %v1798_v57 = vld [vmem:[#allocation5 + $0x12c] sm:$0xf]  ;;  %v1416_v60 = vor.u32 %v1797_v53, %v1413_v54  ;;  %v1790_v5 = vld [vmem:[#allocation5 + $0xe4] sm:$0xf0]  ;;  %v1283_v8 = vld [vmem:[#allocation5 + $0x20] sm:$0xf] }
  0x56   :  { %v2097_v62 = vpack.c.b16 %v364_v61, %v364_v61  ;;  %v1347_v61 = vld [vmem:[#allocation5 + $0xa0] sm:$0xf]  ;;  %v1424_v1 = vor.u32 %v1798_v57, %v1421_v58  ;;  %v1782_v6 = vld [vmem:[#allocation5 + $0xac] sm:$0xf]  ;;  %v1285_v15 = vld [vmem:[#allocation5 + $0x60] sm:$0xf0] }
  0x57   :  { %v1357_v7 = vld [vmem:[#allocation5 + $0xe8] sm:$0xf0]  ;;  %v1774_v11 = vld [vmem:[#allocation5 + $0x64] sm:$0xf0]  ;;  %v1747_v20 = vld [vmem:[#allocation5 + $0x3b0] sm:$0xf] }
  0x58   :  { %1041 = vmatmul.bf16.vlgmr.msra.gmra.mxu2 %v2097_v62  ;;  %1054 = vmatmul.bf16.vlgmr.msra.gmra.mxu3 %v2097_v62  ;;  %v1766_v14 = vld [vmem:[#allocation5 + $0x2c] sm:$0xf]  ;;  %v1887_v21 = vld [vmem:[#allocation5 + $0x3ec] sm:$0xf0]  ;;  %v1879_v22 = vld [vmem:[#allocation5 + $0x3b4] sm:$0xf] }
  0x59   :  { %1015 = vmatmul.bf16.vlgmr.msra.gmra.mxu0 %v2097_v62  ;;  %1028 = vmatmul.bf16.vlgmr.msra.gmra.mxu1 %v2097_v62  ;;  %v1293_v19 = vld [vmem:[#allocation5 + $0x68] sm:$0xf0]  ;;  %v1757_v29 = vld [vmem:[#allocation5 + $0x3f8] sm:$0xf0]  ;;  %v1748_v32 = vor.u32 %v1887_v21, %v1747_v20  ;;  %v1683_v34 = vld [vmem:[#allocation5 + $0x330] sm:$0xf] }
  0x5a   :  { %1111 = vmatpush.bf16.msra.mxu0 %v1732_v63  ;;  %1124 = vmatpush.bf16.msra.mxu1 %v1736_v0  ;;  %v1789_v63 = vld [vmem:[#allocation5 + $0xdc] sm:$0xf0]  ;;  %v1420_v0 = vor.u32 %v1806_v56, %v1419_v55  ;;  %v1296_v31 = vor.u32 %v1766_v14, %v1293_v19  ;;  %v1863_v38 = vld [vmem:[#allocation5 + $0x334] sm:$0xf]  ;;  %v1872_v41 = vld [vmem:[#allocation5 + $0x374] sm:$0xf0] }
  0x5b   :  { %1137 = vmatpush.bf16.msra.mxu2 %v1740_v3  ;;  %1150 = vmatpush.bf16.msra.mxu3 %v1744_v4  ;;  %v1349_v3 = vld [vmem:[#allocation5 + $0xe0] sm:$0xf0]  ;;  %v1355_v4 = vld [vmem:[#allocation5 + $0xa8] sm:$0xf]  ;;  %v1348_v9 = vor.u32 %v1789_v63, %v1347_v61  ;;  %v1864_v42 = vld [vmem:[#allocation5 + $0x33c] sm:$0xf] }
  0x5c   :  { %v1352_v12 = vor.u32 %v1781_v2, %v1349_v3  ;;  %v1356_v16 = vor.u32 %v1790_v5, %v1355_v4  ;;  %v1693_v43 = vld [vmem:[#allocation5 + $0x378] sm:$0xf0]  ;;  %v1619_v46 = vld [vmem:[#allocation5 + $0x2b0] sm:$0xf]  ;;  %v1847_v50 = vld [vmem:[#allocation5 + $0x2b4] sm:$0xf] }
  0x5d   :  { %v1696_v49 = vor.u32 %v1864_v42, %v1693_v43  ;;  %v1856_v53 = vld [vmem:[#allocation5 + $0x2f4] sm:$0xf0]  ;;  %v1848_v54 = vld [vmem:[#allocation5 + $0x2bc] sm:$0xf]  ;;  %v1555_v58 = vld [vmem:[#allocation5 + $0x230] sm:$0xf] }
  0x5e   :  { %1112 = vmatpush.bf16.msra.mxu0 %v1668_v10  ;;  %1125 = vmatpush.bf16.msra.mxu1 %v1672_v13  ;;  %v1773_v10 = vld [vmem:[#allocation5 + $0x5c] sm:$0xf0]  ;;  %v1765_v13 = vld [vmem:[#allocation5 + $0x24] sm:$0xf]  ;;  %v1629_v55 = vld [vmem:[#allocation5 + $0x2f8] sm:$0xf0] }
  0x5f   :  { %1138 = vmatpush.bf16.msra.mxu2 %v1676_v17  ;;  %1151 = vmatpush.bf16.msra.mxu3 %v1680_v18  ;;  %v1360_v17 = vor.u32 %v1782_v6, %v1357_v7  ;;  %v1291_v18 = vld [vmem:[#allocation5 + $0x28] sm:$0xf]  ;;  %v1284_v25 = vor.u32 %v1773_v10, %v1283_v8  ;;  %v1288_v26 = vor.u32 %v1765_v13, %v1285_v15  ;;  %v1831_v63 = vld [vmem:[#allocation5 + $0x234] sm:$0xf]  ;;  %v1840_v2 = vld [vmem:[#allocation5 + $0x274] sm:$0xf0] }
  0x60   :  { %v1292_v30 = vor.u32 %v1774_v11, %v1291_v18  ;;  %v1632_v61 = vor.u32 %v1848_v54, %v1629_v55  ;;  %v1832_v3 = vld [vmem:[#allocation5 + $0x23c] sm:$0xf]  ;;  %v1491_v7 = vld [vmem:[#allocation5 + $0x1b0] sm:$0xf]  ;;  %v1815_v10 = vld [vmem:[#allocation5 + $0x1b4] sm:$0xf] }
  0x61   :  { %v1565_v4 = vld [vmem:[#allocation5 + $0x278] sm:$0xf0]  ;;  %v1823_v8 = vld [vmem:[#allocation5 + $0x1ec] sm:$0xf0]  ;;  %v1493_v13 = vld [vmem:[#allocation5 + $0x1f0] sm:$0xf0] }
  0x62   :  { %1113 = vmatpush.bf16.msra.mxu0 %v1604_v23  ;;  %1126 = vmatpush.bf16.msra.mxu1 %v1608_v24  ;;  %v1749_v23 = vld [vmem:[#allocation5 + $0x3f0] sm:$0xf0]  ;;  %v1755_v24 = vld [vmem:[#allocation5 + $0x3b8] sm:$0xf]  ;;  %v1501_v18 = vld [vmem:[#allocation5 + $0x1f8] sm:$0xf0]  ;;  %v1492_v11 = vor.u32 %v1823_v8, %v1491_v7  ;;  %v1496_v14 = vor.u32 %v1815_v10, %v1493_v13 }
  0x63   :  { %1139 = vmatpush.bf16.msra.mxu2 %v1612_v27  ;;  %1152 = vmatpush.bf16.msra.mxu3 %v1616_v28  ;;  %v1888_v27 = vld [vmem:[#allocation5 + $0x3f4] sm:$0xf0]  ;;  %v1880_v28 = vld [vmem:[#allocation5 + $0x3bc] sm:$0xf]  ;;  %v1752_v33 = vor.u32 %v1879_v22, %v1749_v23  ;;  %v1427_v19 = vld [vmem:[#allocation5 + $0x130] sm:$0xf] }
  0x64   :  { %v1760_v37 = vor.u32 %v1880_v28, %v1757_v29  ;;  %v1499_v15 = vld [vmem:[#allocation5 + $0x1b8] sm:$0xf]  ;;  %v1807_v20 = vld [vmem:[#allocation5 + $0x16c] sm:$0xf0]  ;;  %v1799_v23 = vld [vmem:[#allocation5 + $0x134] sm:$0xf] }
  0x65   :  { %v1437_v28 = vld [vmem:[#allocation5 + $0x178] sm:$0xf0]  ;;  %v1428_v29 = vor.u32 %v1807_v20, %v1427_v19  ;;  %v1299_v43 = vld [vmem:[#allocation5 + $0x30] sm:$0xf] }
  0x66   :  { %1114 = vmatpush.bf16.msra.mxu0 %v1540_v35  ;;  %1127 = vmatpush.bf16.msra.mxu1 %v1544_v36  ;;  %v1871_v35 = vld [vmem:[#allocation5 + $0x36c] sm:$0xf0]  ;;  %v1756_v36 = vor.u32 %v1888_v27, %v1755_v24  ;;  %v1429_v24 = vld [vmem:[#allocation5 + $0x170] sm:$0xf0]  ;;  %v1800_v27 = vld [vmem:[#allocation5 + $0x13c] sm:$0xf] }
  0x67   :  { %1140 = vmatpush.bf16.msra.mxu2 %v1548_v39  ;;  %1153 = vmatpush.bf16.msra.mxu3 %v1552_v40  ;;  %v1685_v39 = vld [vmem:[#allocation5 + $0x370] sm:$0xf0]  ;;  %v1691_v40 = vld [vmem:[#allocation5 + $0x338] sm:$0xf]  ;;  %v1684_v44 = vor.u32 %v1871_v35, %v1683_v34  ;;  %v1440_v34 = vor.u32 %v1800_v27, %v1437_v28 }
  0x68   :  { %1093 = vmatmul.bf16.vlgmr.msrb.gmra.mxu2 %v2097_v62  ;;  %1106 = vmatmul.bf16.vlgmr.msrb.gmra.mxu3 %v2097_v62  ;;  %v1688_v45 = vor.u32 %v1863_v38, %v1685_v39  ;;  %v1783_v35 = vld [vmem:[#allocation5 + $0xb4] sm:$0xf]  ;;  %v1792_v38 = vld [vmem:[#allocation5 + $0xf4] sm:$0xf0]  ;;  %v1784_v39 = vld [vmem:[#allocation5 + $0xbc] sm:$0xf] }
  0x69   :  { %1067 = vmatmul.bf16.vlgmr.msrb.gmra.mxu0 %v2097_v62  ;;  %1080 = vmatmul.bf16.vlgmr.msrb.gmra.mxu1 %v2097_v62 }
  0x6a   :  { %1115 = vmatpush.bf16.msra.mxu0 %v1476_v47  ;;  %1128 = vmatpush.bf16.msra.mxu1 %v1480_v48  ;;  %v1855_v47 = vld [vmem:[#allocation5 + $0x2ec] sm:$0xf0]  ;;  %v1692_v48 = vor.u32 %v1872_v41, %v1691_v40  ;;  %v1373_v40 = vld [vmem:[#allocation5 + $0xf8] sm:$0xf0] }
  0x6b   :  { %1141 = vmatpush.bf16.msra.mxu2 %v1484_v51  ;;  %1154 = vmatpush.bf16.msra.mxu3 %v1488_v52  ;;  %v1621_v51 = vld [vmem:[#allocation5 + $0x2f0] sm:$0xf0]  ;;  %v1627_v52 = vld [vmem:[#allocation5 + $0x2b8] sm:$0xf]  ;;  %v1620_v56 = vor.u32 %v1855_v47, %v1619_v46  ;;  %v1376_v46 = vor.u32 %v1784_v39, %v1373_v40 }
  0x6c   :  { %v1624_v57 = vor.u32 %v1847_v50, %v1621_v51  ;;  %v1767_v47 = vld [vmem:[#allocation5 + $0x34] sm:$0xf]  ;;  %v1776_v50 = vld [vmem:[#allocation5 + $0x74] sm:$0xf0]  ;;  %v1768_v51 = vld [vmem:[#allocation5 + $0x3c] sm:$0xf] }
  0x6e   :  { %1116 = vmatpush.bf16.msra.mxu0 %v1412_v59  ;;  %1129 = vmatpush.bf16.msra.mxu1 %v1416_v60  ;;  %v1839_v59 = vld [vmem:[#allocation5 + $0x26c] sm:$0xf0]  ;;  %v1628_v60 = vor.u32 %v1856_v53, %v1627_v52  ;;  %v1309_v52 = vld [vmem:[#allocation5 + $0x78] sm:$0xf0] }
  0x6f   :  { %1142 = vmatpush.bf16.msra.mxu2 %v1420_v0  ;;  %1155 = vmatpush.bf16.msra.mxu3 %v1424_v1  ;;  %v1557_v0 = vld [vmem:[#allocation5 + $0x270] sm:$0xf0]  ;;  %v1563_v1 = vld [vmem:[#allocation5 + $0x238] sm:$0xf]  ;;  %v1556_v5 = vor.u32 %v1839_v59, %v1555_v58 }
  0x70   :  { %v1560_v6 = vor.u32 %v1831_v63, %v1557_v0 }
  0x72   :  { %1117 = vmatpush.bf16.msra.mxu0 %v1348_v9  ;;  %1130 = vmatpush.bf16.msra.mxu1 %v1352_v12  ;;  %v1564_v9 = vor.u32 %v1840_v2, %v1563_v1  ;;  %v1568_v12 = vor.u32 %v1832_v3, %v1565_v4 }
  0x73   :  { %1143 = vmatpush.bf16.msra.mxu2 %v1356_v16  ;;  %1156 = vmatpush.bf16.msra.mxu3 %v1360_v17  ;;  %v1824_v16 = vld [vmem:[#allocation5 + $0x1f4] sm:$0xf0]  ;;  %v1816_v17 = vld [vmem:[#allocation5 + $0x1bc] sm:$0xf] }
  0x74   :  { %v1500_v21 = vor.u32 %v1824_v16, %v1499_v15  ;;  %v1504_v22 = vor.u32 %v1816_v17, %v1501_v18 }
  0x76   :  { %1118 = vmatpush.bf16.msra.mxu0 %v1284_v25  ;;  %1131 = vmatpush.bf16.msra.mxu1 %v1288_v26  ;;  %v1435_v25 = vld [vmem:[#allocation5 + $0x138] sm:$0xf] }
  0x77   :  { %1144 = vmatpush.bf16.msra.mxu2 %v1292_v30  ;;  %1157 = vmatpush.bf16.msra.mxu3 %v1296_v31  ;;  %v1808_v26 = vld [vmem:[#allocation5 + $0x174] sm:$0xf0]  ;;  %v1432_v30 = vor.u32 %v1799_v23, %v1429_v24  ;;  %v1363_v31 = vld [vmem:[#allocation5 + $0xb0] sm:$0xf]  ;;  %v300_v24 = vld [vmem:[#allocation7 + $0x8] sm:$0xff] }
  0x78   :  { %v311_v27 = vperm.slane %v300_v24, 0  ;;  %v312_v28 = vperm.slane %v300_v24, 1 }
  0x79   :  { %1119 = vmatmul.bf16.vlgmr.msra.gmra.mxu0 %v2097_v62  ;;  %1132 = vmatmul.bf16.vlgmr.msra.gmra.mxu1 %v2097_v62 }
  0x7a   :  { %1163 = vmatpush.bf16.msrb.mxu0 %v1748_v32  ;;  %1176 = vmatpush.bf16.msrb.mxu1 %v1752_v33  ;;  %v1791_v32 = vld [vmem:[#allocation5 + $0xec] sm:$0xf0]  ;;  %v1436_v33 = vor.u32 %v1808_v26, %v1435_v25 }
  0x7b   :  { %1189 = vmatpush.bf16.msrb.mxu2 %v1756_v36  ;;  %1202 = vmatpush.bf16.msrb.mxu3 %v1760_v37  ;;  %v1365_v36 = vld [vmem:[#allocation5 + $0xf0] sm:$0xf0]  ;;  %v1371_v37 = vld [vmem:[#allocation5 + $0xb8] sm:$0xf]  ;;  %v1364_v41 = vor.u32 %v1791_v32, %v1363_v31 }
  0x7c   :  { %1145 = vmatmul.bf16.vlgmr.msra.gmra.mxu2 %v2097_v62  ;;  %1158 = vmatmul.bf16.vlgmr.msra.gmra.mxu3 %v2097_v62  ;;  %v1368_v42 = vor.u32 %v1783_v35, %v1365_v36 }
  0x7e   :  { %1164 = vmatpush.bf16.msrb.mxu0 %v1684_v44  ;;  %1177 = vmatpush.bf16.msrb.mxu1 %v1688_v45  ;;  %v1775_v44 = vld [vmem:[#allocation5 + $0x6c] sm:$0xf0]  ;;  %v1372_v45 = vor.u32 %v1792_v38, %v1371_v37 }
  0x7f   :  { %1190 = vmatpush.bf16.msrb.mxu2 %v1692_v48  ;;  %1203 = vmatpush.bf16.msrb.mxu3 %v1696_v49  ;;  %v1301_v48 = vld [vmem:[#allocation5 + $0x70] sm:$0xf0]  ;;  %v1307_v49 = vld [vmem:[#allocation5 + $0x38] sm:$0xf]  ;;  %v1300_v53 = vor.u32 %v1775_v44, %v1299_v43  ;;  %v315_v43 = vperm.slane %v300_v24, 4  ;;  %v316_v44 = vperm.slane %v300_v24, 5 }
  0x80   :  { %v1304_v54 = vor.u32 %v1767_v47, %v1301_v48  ;;  %v1308_v55 = vor.u32 %v1776_v50, %v1307_v49  ;;  %v317_v49 = vperm.slane %v300_v24, 6  ;;  %v318_v50 = vperm.slane %v300_v24, 7 }
  0x82   :  { %1165 = vmatpush.bf16.msrb.mxu0 %v1620_v56  ;;  %1178 = vmatpush.bf16.msrb.mxu1 %v1624_v57  ;;  %v1312_v56 = vor.u32 %v1768_v51, %v1309_v52  ;;  %v299_v57 = vld [vmem:[#allocation7] sm:$0xff] }
  0x83   :  { %1191 = vmatpush.bf16.msrb.mxu2 %v1628_v60  ;;  %1204 = vmatpush.bf16.msrb.mxu3 %v1632_v61  ;;  %v303_v58 = vperm.slane %v299_v57, 0  ;;  %v304_v59 = vperm.slane %v299_v57, 1  ;;  %v305_v1 = vperm.slane %v299_v57, 2  ;;  %v306_v2 = vperm.slane %v299_v57, 3 }
  0x84   :  { %v308_v10 = vperm.slane %v299_v57, 5  ;;  %v309_v18 = vperm.slane %v299_v57, 6 }
  0x86   :  { %1166 = vmatpush.bf16.msrb.mxu0 %v1556_v5  ;;  %1179 = vmatpush.bf16.msrb.mxu1 %v1560_v6 }
  0x87   :  { %1192 = vmatpush.bf16.msrb.mxu2 %v1564_v9  ;;  %1205 = vmatpush.bf16.msrb.mxu3 %v1568_v12  ;;  %v307_v12 = vperm.slane %v299_v57, 4 }
  0x8a   :  { %1167 = vmatpush.bf16.msrb.mxu0 %v1492_v11  ;;  %1180 = vmatpush.bf16.msrb.mxu1 %v1496_v14  ;;  %v310_v11 = vperm.slane %v299_v57, 7 }
  0x8b   :  { %1193 = vmatpush.bf16.msrb.mxu2 %v1500_v21  ;;  %1206 = vmatpush.bf16.msrb.mxu3 %v1504_v22 }
  0x8e   :  { %1168 = vmatpush.bf16.msrb.mxu0 %v1428_v29  ;;  %1181 = vmatpush.bf16.msrb.mxu1 %v1432_v30 }
  0x8f   :  { %1194 = vmatpush.bf16.msrb.mxu2 %v1436_v33  ;;  %1207 = vmatpush.bf16.msrb.mxu3 %v1440_v34  ;;  %v313_v33 = vperm.slane %v300_v24, 2  ;;  %v314_v34 = vperm.slane %v300_v24, 3 }
  0x92   :  { %1169 = vmatpush.bf16.msrb.mxu0 %v1364_v41  ;;  %1182 = vmatpush.bf16.msrb.mxu1 %v1368_v42 }
  0x93   :  { %1195 = vmatpush.bf16.msrb.mxu2 %v1372_v45  ;;  %1208 = vmatpush.bf16.msrb.mxu3 %v1376_v46 }
  0x96   :  { %1170 = vmatpush.bf16.msrb.mxu0 %v1300_v53  ;;  %1183 = vmatpush.bf16.msrb.mxu1 %v1304_v54 }
  0x97   :  { %1196 = vmatpush.bf16.msrb.mxu2 %v1308_v55  ;;  %1209 = vmatpush.bf16.msrb.mxu3 %v1312_v56 }
  0x99   :  { %1171 = vmatmul.bf16.vlgmr.msrb.gmra.mxu0 %v2097_v62  ;;  %1184 = vmatmul.bf16.vlgmr.msrb.gmra.mxu1 %v2097_v62 }
  0x9a   :  { %1197 = vmatmul.bf16.vlgmr.msrb.gmra.mxu2 %v2097_v62  ;;  %1210 = vmatmul.bf16.vlgmr.msrb.gmra.mxu3 %v2097_v62 }
  0xd6   :  { %v1016_v60 = vpop.f32.mrf.mxu0  ;;  %v1029_v61 = vpop.f32.mrf.mxu1 }
  0xd7   :  { %v1017_v63 = vadd.f32 %v1016_v60, %v303_v58  ;;  %v1030_v0 = vadd.f32 %v1029_v61, %v304_v59 }
  0xd9   :  { %1215 = vst [vmem:[#allocation8] sm:$0xff] %v1017_v63 }
  0xda   :  { %1216 = vst [vmem:[#allocation8 + $0x8] sm:$0xff] %v1030_v0 }
  0xdb   :  { %v1042_v3 = vpop.f32.mrf.mxu2  ;;  %v1055_v4 = vpop.f32.mrf.mxu3 }
  0xdc   :  { %v1043_v5 = vadd.f32 %v1042_v3, %v305_v1  ;;  %v1056_v6 = vadd.f32 %v1055_v4, %v306_v2 }
  0xde   :  { %1217 = vst [vmem:[#allocation8 + $0x10] sm:$0xff] %v1043_v5  ;;  %v1018_v7 = vpop.f32.mrf.mxu0  ;;  %v1031_v8 = vpop.f32.mrf.mxu1 }
  0xdf   :  { %1218 = vst [vmem:[#allocation8 + $0x18] sm:$0xff] %v1056_v6 }
  0xe3   :  { %v1044_v62 = vpop.f32.mrf.mxu2  ;;  %v1057_v9 = vpop.f32.mrf.mxu3 }
  0xe6   :  { %v1068_v13 = vpop.f32.mrf.mxu0  ;;  %v1081_v15 = vpop.f32.mrf.mxu1 }
  0xe7   :  { %v1069_v16 = vadd.f32 %v1068_v13, %v307_v12  ;;  %v1082_v17 = vadd.f32 %v1081_v15, %v308_v10 }
  0xe9   :  { %1219 = vst [vmem:[#allocation8 + $0x20] sm:$0xff] %v1069_v16 }
  0xea   :  { %1220 = vst [vmem:[#allocation8 + $0x28] sm:$0xff] %v1082_v17 }
  0xeb   :  { %v1094_v14 = vpop.f32.mrf.mxu2  ;;  %v1107_v19 = vpop.f32.mrf.mxu3 }
  0xec   :  { %v1095_v20 = vadd.f32 %v1094_v14, %v309_v18  ;;  %v1108_v21 = vadd.f32 %v1107_v19, %v310_v11 }
  0xee   :  { %1221 = vst [vmem:[#allocation8 + $0x30] sm:$0xff] %v1095_v20  ;;  %v1070_v22 = vpop.f32.mrf.mxu0  ;;  %v1083_v23 = vpop.f32.mrf.mxu1 }
  0xef   :  { %1222 = vst [vmem:[#allocation8 + $0x38] sm:$0xff] %v1108_v21 }
  0xf3   :  { %v1096_v25 = vpop.f32.mrf.mxu2  ;;  %v1109_v26 = vpop.f32.mrf.mxu3 }
  0xf6   :  { %v1120_v29 = vpop.f32.mrf.mxu0  ;;  %v1133_v30 = vpop.f32.mrf.mxu1 }
  0xf7   :  { %v1121_v31 = vadd.f32 %v1120_v29, %v311_v27  ;;  %v1134_v32 = vadd.f32 %v1133_v30, %v312_v28 }
  0xf9   :  { %1223 = vst [vmem:[#allocation8 + $0x40] sm:$0xff] %v1121_v31 }
  0xfa   :  { %1224 = vst [vmem:[#allocation8 + $0x48] sm:$0xff] %v1134_v32 }
  0xfe   :  { %v1122_v39 = vpop.f32.mrf.mxu0  ;;  %v1135_v40 = vpop.f32.mrf.mxu1 }
  0xff   :  { %v1146_v35 = vpop.f32.mrf.mxu2  ;;  %v1159_v36 = vpop.f32.mrf.mxu3 }
 0x100   :  { %v1147_v37 = vadd.f32 %v1146_v35, %v313_v33  ;;  %v1160_v38 = vadd.f32 %v1159_v36, %v314_v34 }
 0x102   :  { %1225 = vst [vmem:[#allocation8 + $0x50] sm:$0xff] %v1147_v37 }
 0x103   :  { %1226 = vst [vmem:[#allocation8 + $0x58] sm:$0xff] %v1160_v38 }
 0x107   :  { %v1148_v41 = vpop.f32.mrf.mxu2  ;;  %v1161_v42 = vpop.f32.mrf.mxu3 }
 0x116   :  { %v1172_v45 = vpop.f32.mrf.mxu0  ;;  %v1185_v46 = vpop.f32.mrf.mxu1 }
 0x117   :  { %v1173_v47 = vadd.f32 %v1172_v45, %v315_v43  ;;  %v1186_v48 = vadd.f32 %v1185_v46, %v316_v44 }
 0x119   :  { %1227 = vst [vmem:[#allocation8 + $0x60] sm:$0xff] %v1173_v47 }
 0x11a   :  { %1228 = vst [vmem:[#allocation8 + $0x68] sm:$0xff] %v1186_v48 }
 0x11d   :  { %v1198_v51 = vpop.f32.mrf.mxu2  ;;  %v1211_v52 = vpop.f32.mrf.mxu3 }
 0x11e   :  { %v1199_v53 = vadd.f32 %v1198_v51, %v317_v49  ;;  %v1212_v54 = vadd.f32 %v1211_v52, %v318_v50  ;;  %v1174_v55 = vpop.f32.mrf.mxu0  ;;  %v1187_v56 = vpop.f32.mrf.mxu1 }
 0x120   :  { %1229 = vst [vmem:[#allocation8 + $0x70] sm:$0xff] %v1199_v53 }
 0x121   :  { %1230 = vst [vmem:[#allocation8 + $0x78] sm:$0xff] %v1212_v54 }
 0x122   :  { %1241 = dma.vmem_to_hbm [thread:$0]  %s1237_s2, 2048, %s1239_s4, [#allocation4]  }
 0x125   :  { %v1200_v57 = vpop.f32.mrf.mxu2  ;;  %v1213_v58 = vpop.f32.mrf.mxu3 }
 0x126   :  { %2038 = dma.done.wait [#allocation4], 2048  }
 0x127   :  { %2039 = vsyncadd [#allocation4], 4294965248 }
 0x128   :  { %1246 = vsyncpa [#allocation3], 1 }
 0x129   :  { %1247 = vsyncpa [#allocation6], 1 }
 0x12a   :  { %1248 = vsyncpa [#allocation4], 1 }

</bundles_post_ra>
